<compile_context>
chip_gen: v7x
topology: tpu7x:2x2x1
jax: 0.10.0
libtpu: 0.0.40
codegen_flags: <defaults>
</compile_context>

<pallas_src>
import jax
import jax.numpy as jnp
from jax.experimental import pallas as pl
from jax.experimental.pallas import tpu as pltpu

# --- model hyperparameters (the PyTorch module reads these as globals) ---
N_CLASS = 16     # vocab size == number of output classes
EMB_SIZE = 32    # embedding dim
N_HIDDEN = 32    # LSTM hidden size
BATCH = 2
SEQ = 8

LANES = 4 * N_HIDDEN                      # 128: packed gate width [f | i | o | a]

# Row offsets of each constant inside the packed slab (all 8-sublane aligned).
R_EMBWX = 0                               # (N_CLASS, 4H)   emb @ [W_fx|W_ix|W_ox|2*W_ax]
R_WAA4 = R_EMBWX + N_CLASS                # (N_HIDDEN, 4H)  [W_aa|W_aa|W_aa|2*W_aa]
R_BX = R_WAA4 + N_HIDDEN                  # (1, 4H)         [b_f+b_a|b_i+b_a|b_o+b_a|2*b_a]
R_WOUT = ((R_BX + 1 + 7) // 8) * 8        # (N_HIDDEN, 128) W_out, zero-padded lanes >= C
R_BOUT = R_WOUT + N_HIDDEN                # (1, 128)        b_out, zero-padded lanes >= C
SLAB_ROWS = ((R_BOUT + 1 + 7) // 8) * 8   # 96


def lstm_kernel(ids_ref, slab_ref, out_ref):
    """ids_ref:  VMEM (S*B, 1) int32, time-major token ids (row r = t*B + b).
       slab_ref: VMEM (SLAB_ROWS, 128) f32 packed constants (single DMA).
       out_ref:  VMEM (B, 128) f32; logits live in lanes [0, N_CLASS)."""
    SB = ids_ref.shape[0]
    B = out_ref.shape[0]
    S = SB // B
    H = N_HIDDEN
    V = N_CLASS

    # Static, sublane-aligned loads from the packed constant slab.
    emb_wx = slab_ref[R_EMBWX:R_EMBWX + V, :]      # (V, 4H)
    waa4 = slab_ref[R_WAA4:R_WAA4 + H, :]          # (H, 4H)
    b_x = slab_ref[R_BX:R_BX + 1, :]               # (1, 4H)
    w_out = slab_ref[R_WOUT:R_WOUT + H, :]         # (H, 128)
    b_out = slab_ref[R_BOUT:R_BOUT + 1, :]         # (1, 128)

    # Fused embedding gather + all four input projections: one one-hot MXU matmul.
    ids = ids_ref[...]                                                   # (SB, 1) int32
    cols = jax.lax.broadcasted_iota(jnp.int32, (SB, V), 1)
    onehot = (cols == ids).astype(jnp.float32)                           # (SB, V)
    xw = jnp.dot(onehot, emb_wx, preferred_element_type=jnp.float32) + b_x   # (SB, 4H)

    h = jnp.zeros((B, H), jnp.float32)
    c = jnp.zeros((B, H), jnp.float32)

    # Fully unrolled serial recurrence. Per step: ONE lane-dense (B,H)@(H,4H) matmul,
    # ONE (B,4H) add, ONE sigmoid over all 128 lanes, plus tanh(c).
    for t in range(S):
        pre = xw[t * B:(t + 1) * B, :] + jnp.dot(
            h, waa4, preferred_element_type=jnp.float32)                 # (B, 4H)
        s = jax.nn.sigmoid(pre)
        f = s[:, 0 * H:1 * H]
        i = s[:, 1 * H:2 * H]
        o = s[:, 2 * H:3 * H]
        g = 2.0 * s[:, 3 * H:4 * H] - 1.0   # == tanh(unscaled candidate pre-activation)
        c = f * c + i * g
        h = o * jnp.tanh(c)

    # Final classifier on h_n (== outputs[-1]); lane-padded -> unmasked 128-lane store.
    out_ref[...] = jnp.dot(h, w_out, preferred_element_type=jnp.float32) + b_out


@jax.jit
def my_module_lstm(x_ids, slab):
    """x_ids: int32 [batch, seq] token indices; slab: packed constants.
    Returns [batch, n_class] logits."""
    B, S = x_ids.shape
    ids_tm = x_ids.T.astype(jnp.int32).reshape(S * B, 1)   # time-major: row r = t*B + b
    vmem = pltpu.MemorySpace.VMEM
    out = pl.pallas_call(
        lstm_kernel,
        out_shape=jax.ShapeDtypeStruct((B, LANES), jnp.float32),
        in_specs=[pl.BlockSpec(memory_space=vmem),      # ids (whole array, single buffer)
                  pl.BlockSpec(memory_space=vmem)],     # packed constant slab
        out_specs=pl.BlockSpec(memory_space=vmem),
    )(ids_tm, slab)
    return out[:, :N_CLASS]


def init_params(key):
    ks = jax.random.split(key, 8)
    scale = 0.1
    p = {
        "emb":   scale * jax.random.normal(ks[0], (N_CLASS, EMB_SIZE), jnp.float32),
        # Linear weights stored [in, out] (transposed vs. torch's [out, in])
        "w_ax":  scale * jax.random.normal(ks[1], (EMB_SIZE, N_HIDDEN), jnp.float32),
        "w_fx":  scale * jax.random.normal(ks[2], (EMB_SIZE, N_HIDDEN), jnp.float32),
        "w_ix":  scale * jax.random.normal(ks[3], (EMB_SIZE, N_HIDDEN), jnp.float32),
        "w_ox":  scale * jax.random.normal(ks[4], (EMB_SIZE, N_HIDDEN), jnp.float32),
        "w_aa":  scale * jax.random.normal(ks[5], (N_HIDDEN, N_HIDDEN), jnp.float32),
        "w_out": scale * jax.random.normal(ks[6], (N_HIDDEN, N_CLASS), jnp.float32),
        # nn.Parameter(torch.ones([...])) biases
        "b_a":   jnp.ones((1, N_HIDDEN), jnp.float32),
        "b_f":   jnp.ones((1, N_HIDDEN), jnp.float32),
        "b_i":   jnp.ones((1, N_HIDDEN), jnp.float32),
        "b_o":   jnp.ones((1, N_HIDDEN), jnp.float32),
        "b_out": jnp.ones((1, N_CLASS), jnp.float32),
    }
    return p


def pack_params(p):
    """One-time host-side fold of all constants into a single lane-dense
    (SLAB_ROWS, 128) f32 slab.

    Column blocks are [f | i | o | a].  The candidate ('a') block is pre-scaled by 2 so
    the kernel can use tanh(x) == 2*sigmoid(2x) - 1 and run a single sigmoid per step.
    b_a is folded into every gate bias (it appears in every pre-activation in torch).
    The embedding table is folded into the input projection: emb @ W_x -> (V, 4H)."""
    H, V, C = N_HIDDEN, N_CLASS, N_CLASS
    w_x = jnp.concatenate(
        [p["w_fx"], p["w_ix"], p["w_ox"], 2.0 * p["w_ax"]], axis=1)        # (E, 4H)
    emb_wx = p["emb"] @ w_x                                                # (V, 4H)
    waa4 = jnp.concatenate(
        [p["w_aa"], p["w_aa"], p["w_aa"], 2.0 * p["w_aa"]], axis=1)        # (H, 4H)
    b_x = jnp.concatenate(
        [p["b_f"] + p["b_a"], p["b_i"] + p["b_a"],
         p["b_o"] + p["b_a"], 2.0 * p["b_a"]], axis=1)                     # (1, 4H)
    w_out = jnp.zeros((H, LANES), jnp.float32).at[:, :C].set(p["w_out"])   # lane-padded
    b_out = jnp.zeros((1, LANES), jnp.float32).at[:, :C].set(p["b_out"])   # lane-padded

    slab = jnp.zeros((SLAB_ROWS, LANES), jnp.float32)
    slab = slab.at[R_EMBWX:R_EMBWX + V, :].set(emb_wx)
    slab = slab.at[R_WAA4:R_WAA4 + H, :].set(waa4)
    slab = slab.at[R_BX:R_BX + 1, :].set(b_x)
    slab = slab.at[R_WOUT:R_WOUT + H, :].set(w_out)
    slab = slab.at[R_BOUT:R_BOUT + 1, :].set(b_out)
    return slab


def reference_forward(x_ids, params):
    """Pure-JAX reference mirroring the PyTorch forward, for a sanity check."""
    x_emb = jnp.take(params["emb"], x_ids, axis=0).transpose(1, 0, 2)
    B = x_emb.shape[1]
    h = jnp.zeros((B, N_HIDDEN), jnp.float32)
    c = jnp.zeros((B, N_HIDDEN), jnp.float32)
    for t in range(x_emb.shape[0]):
        x = x_emb[t]
        rec = h @ params["w_aa"] + params["b_a"]
        ft = jax.nn.sigmoid(x @ params["w_fx"] + params["b_f"] + rec)
        it = jax.nn.sigmoid(x @ params["w_ix"] + params["b_i"] + rec)
        ot = jax.nn.sigmoid(x @ params["w_ox"] + params["b_o"] + rec)
        c_pre = jnp.tanh(x @ params["w_ax"] + rec)
        c = ft * c + it * c_pre
        h = ot * jnp.tanh(c)
    return h @ params["w_out"] + params["b_out"]


if __name__ == "__main__":
    key = jax.random.PRNGKey(0)
    pkey, xkey = jax.random.split(key)
    params = init_params(pkey)
    slab = pack_params(params)
    x_ids = jax.random.randint(xkey, (BATCH, SEQ), 0, N_CLASS, dtype=jnp.int32)

    out = my_module_lstm(x_ids, slab)
    out = jax.block_until_ready(out)

    ref = reference_forward(x_ids, params)
    assert out.shape == (BATCH, N_CLASS), out.shape
    assert jnp.allclose(out, ref, atol=1e-4, rtol=1e-4), "mismatch vs reference"
    print("KERNEL_OK")
</pallas_src>

<mosaic_0001>
module attributes {stable_mosaic.version = 11 : i64} {
  func.func @lstm_kernel(%arg0: memref<16x1xi32, #tpu.memory_space<vmem>>, %arg1: memref<96x128xf32, #tpu.memory_space<vmem>>, %arg2: memref<2x128xf32, #tpu.memory_space<vmem>>) attributes {dimension_semantics = [], scalar_prefetch = 0 : i64, scratch_operands = 0 : i64, tpu.core_type = #tpu.core_type<tc>} {
    %c0 = arith.constant 0 : index
    %c0_0 = arith.constant 0 : index
    %0 = vector.load %arg1[%c0, %c0_0] : memref<96x128xf32, #tpu.memory_space<vmem>>, vector<16x128xf32>
    %c16 = arith.constant 16 : index
    %c0_1 = arith.constant 0 : index
    %1 = vector.load %arg1[%c16, %c0_1] : memref<96x128xf32, #tpu.memory_space<vmem>>, vector<32x128xf32>
    %c48 = arith.constant 48 : index
    %c0_2 = arith.constant 0 : index
    %2 = vector.load %arg1[%c48, %c0_2] : memref<96x128xf32, #tpu.memory_space<vmem>>, vector<1x128xf32>
    %c56 = arith.constant 56 : index
    %c0_3 = arith.constant 0 : index
    %3 = vector.load %arg1[%c56, %c0_3] : memref<96x128xf32, #tpu.memory_space<vmem>>, vector<32x128xf32>
    %c88 = arith.constant 88 : index
    %c0_4 = arith.constant 0 : index
    %4 = vector.load %arg1[%c88, %c0_4] : memref<96x128xf32, #tpu.memory_space<vmem>>, vector<1x128xf32>
    %c0_5 = arith.constant 0 : index
    %c0_6 = arith.constant 0 : index
    %5 = vector.load %arg0[%c0_5, %c0_6] : memref<16x1xi32, #tpu.memory_space<vmem>>, vector<16x1xi32>
    %6 = tpu.iota {dimensions = array<i32: 1>} : vector<16x16xi32>
    %7 = vector.broadcast %5 : vector<16x1xi32> to vector<16x16xi32>
    %8 = arith.cmpi eq, %6, %7 : vector<16x16xi32>
    %9 = arith.extui %8 : vector<16x16xi1> to vector<16x16xi32>
    %10 = arith.sitofp %9 : vector<16x16xi32> to vector<16x16xf32>
    %cst = arith.constant dense<0.000000e+00> : vector<16x128xf32>
    %11 = tpu.matmul %10, %0, %cst {dimension_numbers = #tpu.dot_dimension_numbers<[1], [0], [0], [1], [0, 0, 1, 1], [], []>} : vector<16x16xf32>, vector<16x128xf32>, vector<16x128xf32> -> vector<16x128xf32>
    %12 = vector.broadcast %2 : vector<1x128xf32> to vector<16x128xf32>
    %13 = arith.addf %11, %12 : vector<16x128xf32>
    %cst_7 = arith.constant 0.000000e+00 : f32
    %14 = vector.broadcast %cst_7 : f32 to vector<2x32xf32>
    %cst_8 = arith.constant 0.000000e+00 : f32
    %15 = vector.broadcast %cst_8 : f32 to vector<2x32xf32>
    %16 = vector.extract_strided_slice %13 {offsets = [0, 0], sizes = [2, 128], strides = [1, 1]} : vector<16x128xf32> to vector<2x128xf32>
    %cst_9 = arith.constant dense<0.000000e+00> : vector<2x128xf32>
    %17 = tpu.matmul %14, %1, %cst_9 {dimension_numbers = #tpu.dot_dimension_numbers<[1], [0], [0], [1], [0, 0, 1, 1], [], []>} : vector<2x32xf32>, vector<32x128xf32>, vector<2x128xf32> -> vector<2x128xf32>
    %18 = arith.addf %16, %17 : vector<2x128xf32>
    %19 = arith.negf %18 : vector<2x128xf32>
    %20 = math.exp %19 : vector<2x128xf32>
    %cst_10 = arith.constant 1.000000e+00 : f32
    %21 = vector.broadcast %cst_10 : f32 to vector<2x128xf32>
    %22 = arith.addf %21, %20 : vector<2x128xf32>
    %23 = arith.divf %21, %22 : vector<2x128xf32>
    %24 = vector.extract_strided_slice %23 {offsets = [0, 0], sizes = [2, 32], strides = [1, 1]} : vector<2x128xf32> to vector<2x32xf32>
    %25 = vector.extract_strided_slice %23 {offsets = [0, 32], sizes = [2, 32], strides = [1, 1]} : vector<2x128xf32> to vector<2x32xf32>
    %26 = vector.extract_strided_slice %23 {offsets = [0, 64], sizes = [2, 32], strides = [1, 1]} : vector<2x128xf32> to vector<2x32xf32>
    %27 = vector.extract_strided_slice %23 {offsets = [0, 96], sizes = [2, 32], strides = [1, 1]} : vector<2x128xf32> to vector<2x32xf32>
    %cst_11 = arith.constant 2.000000e+00 : f32
    %28 = vector.broadcast %cst_11 : f32 to vector<2x32xf32>
    %29 = arith.mulf %28, %27 : vector<2x32xf32>
    %cst_12 = arith.constant 1.000000e+00 : f32
    %30 = vector.broadcast %cst_12 : f32 to vector<2x32xf32>
    %31 = arith.subf %29, %30 : vector<2x32xf32>
    %32 = arith.mulf %24, %15 : vector<2x32xf32>
    %33 = arith.mulf %25, %31 : vector<2x32xf32>
    %34 = arith.addf %32, %33 : vector<2x32xf32>
    %35 = math.tanh %34 : vector<2x32xf32>
    %36 = arith.mulf %26, %35 : vector<2x32xf32>
    %37 = vector.extract_strided_slice %13 {offsets = [2, 0], sizes = [2, 128], strides = [1, 1]} : vector<16x128xf32> to vector<2x128xf32>
    %cst_13 = arith.constant dense<0.000000e+00> : vector<2x128xf32>
    %38 = tpu.matmul %36, %1, %cst_13 {dimension_numbers = #tpu.dot_dimension_numbers<[1], [0], [0], [1], [0, 0, 1, 1], [], []>} : vector<2x32xf32>, vector<32x128xf32>, vector<2x128xf32> -> vector<2x128xf32>
    %39 = arith.addf %37, %38 : vector<2x128xf32>
    %40 = arith.negf %39 : vector<2x128xf32>
    %41 = math.exp %40 : vector<2x128xf32>
    %cst_14 = arith.constant 1.000000e+00 : f32
    %42 = vector.broadcast %cst_14 : f32 to vector<2x128xf32>
    %43 = arith.addf %42, %41 : vector<2x128xf32>
    %44 = arith.divf %42, %43 : vector<2x128xf32>
    %45 = vector.extract_strided_slice %44 {offsets = [0, 0], sizes = [2, 32], strides = [1, 1]} : vector<2x128xf32> to vector<2x32xf32>
    %46 = vector.extract_strided_slice %44 {offsets = [0, 32], sizes = [2, 32], strides = [1, 1]} : vector<2x128xf32> to vector<2x32xf32>
    %47 = vector.extract_strided_slice %44 {offsets = [0, 64], sizes = [2, 32], strides = [1, 1]} : vector<2x128xf32> to vector<2x32xf32>
    %48 = vector.extract_strided_slice %44 {offsets = [0, 96], sizes = [2, 32], strides = [1, 1]} : vector<2x128xf32> to vector<2x32xf32>
    %cst_15 = arith.constant 2.000000e+00 : f32
    %49 = vector.broadcast %cst_15 : f32 to vector<2x32xf32>
    %50 = arith.mulf %49, %48 : vector<2x32xf32>
    %cst_16 = arith.constant 1.000000e+00 : f32
    %51 = vector.broadcast %cst_16 : f32 to vector<2x32xf32>
    %52 = arith.subf %50, %51 : vector<2x32xf32>
    %53 = arith.mulf %45, %34 : vector<2x32xf32>
    %54 = arith.mulf %46, %52 : vector<2x32xf32>
    %55 = arith.addf %53, %54 : vector<2x32xf32>
    %56 = math.tanh %55 : vector<2x32xf32>
    %57 = arith.mulf %47, %56 : vector<2x32xf32>
    %58 = vector.extract_strided_slice %13 {offsets = [4, 0], sizes = [2, 128], strides = [1, 1]} : vector<16x128xf32> to vector<2x128xf32>
    %cst_17 = arith.constant dense<0.000000e+00> : vector<2x128xf32>
    %59 = tpu.matmul %57, %1, %cst_17 {dimension_numbers = #tpu.dot_dimension_numbers<[1], [0], [0], [1], [0, 0, 1, 1], [], []>} : vector<2x32xf32>, vector<32x128xf32>, vector<2x128xf32> -> vector<2x128xf32>
    %60 = arith.addf %58, %59 : vector<2x128xf32>
    %61 = arith.negf %60 : vector<2x128xf32>
    %62 = math.exp %61 : vector<2x128xf32>
    %cst_18 = arith.constant 1.000000e+00 : f32
    %63 = vector.broadcast %cst_18 : f32 to vector<2x128xf32>
    %64 = arith.addf %63, %62 : vector<2x128xf32>
    %65 = arith.divf %63, %64 : vector<2x128xf32>
    %66 = vector.extract_strided_slice %65 {offsets = [0, 0], sizes = [2, 32], strides = [1, 1]} : vector<2x128xf32> to vector<2x32xf32>
    %67 = vector.extract_strided_slice %65 {offsets = [0, 32], sizes = [2, 32], strides = [1, 1]} : vector<2x128xf32> to vector<2x32xf32>
    %68 = vector.extract_strided_slice %65 {offsets = [0, 64], sizes = [2, 32], strides = [1, 1]} : vector<2x128xf32> to vector<2x32xf32>
    %69 = vector.extract_strided_slice %65 {offsets = [0, 96], sizes = [2, 32], strides = [1, 1]} : vector<2x128xf32> to vector<2x32xf32>
    %cst_19 = arith.constant 2.000000e+00 : f32
    %70 = vector.broadcast %cst_19 : f32 to vector<2x32xf32>
    %71 = arith.mulf %70, %69 : vector<2x32xf32>
    %cst_20 = arith.constant 1.000000e+00 : f32
    %72 = vector.broadcast %cst_20 : f32 to vector<2x32xf32>
    %73 = arith.subf %71, %72 : vector<2x32xf32>
    %74 = arith.mulf %66, %55 : vector<2x32xf32>
    %75 = arith.mulf %67, %73 : vector<2x32xf32>
    %76 = arith.addf %74, %75 : vector<2x32xf32>
    %77 = math.tanh %76 : vector<2x32xf32>
    %78 = arith.mulf %68, %77 : vector<2x32xf32>
    %79 = vector.extract_strided_slice %13 {offsets = [6, 0], sizes = [2, 128], strides = [1, 1]} : vector<16x128xf32> to vector<2x128xf32>
    %cst_21 = arith.constant dense<0.000000e+00> : vector<2x128xf32>
    %80 = tpu.matmul %78, %1, %cst_21 {dimension_numbers = #tpu.dot_dimension_numbers<[1], [0], [0], [1], [0, 0, 1, 1], [], []>} : vector<2x32xf32>, vector<32x128xf32>, vector<2x128xf32> -> vector<2x128xf32>
    %81 = arith.addf %79, %80 : vector<2x128xf32>
    %82 = arith.negf %81 : vector<2x128xf32>
    %83 = math.exp %82 : vector<2x128xf32>
    %cst_22 = arith.constant 1.000000e+00 : f32
    %84 = vector.broadcast %cst_22 : f32 to vector<2x128xf32>
    %85 = arith.addf %84, %83 : vector<2x128xf32>
    %86 = arith.divf %84, %85 : vector<2x128xf32>
    %87 = vector.extract_strided_slice %86 {offsets = [0, 0], sizes = [2, 32], strides = [1, 1]} : vector<2x128xf32> to vector<2x32xf32>
    %88 = vector.extract_strided_slice %86 {offsets = [0, 32], sizes = [2, 32], strides = [1, 1]} : vector<2x128xf32> to vector<2x32xf32>
    %89 = vector.extract_strided_slice %86 {offsets = [0, 64], sizes = [2, 32], strides = [1, 1]} : vector<2x128xf32> to vector<2x32xf32>
    %90 = vector.extract_strided_slice %86 {offsets = [0, 96], sizes = [2, 32], strides = [1, 1]} : vector<2x128xf32> to vector<2x32xf32>
    %cst_23 = arith.constant 2.000000e+00 : f32
    %91 = vector.broadcast %cst_23 : f32 to vector<2x32xf32>
    %92 = arith.mulf %91, %90 : vector<2x32xf32>
    %cst_24 = arith.constant 1.000000e+00 : f32
    %93 = vector.broadcast %cst_24 : f32 to vector<2x32xf32>
    %94 = arith.subf %92, %93 : vector<2x32xf32>
    %95 = arith.mulf %87, %76 : vector<2x32xf32>
    %96 = arith.mulf %88, %94 : vector<2x32xf32>
    %97 = arith.addf %95, %96 : vector<2x32xf32>
    %98 = math.tanh %97 : vector<2x32xf32>
    %99 = arith.mulf %89, %98 : vector<2x32xf32>
    %100 = vector.extract_strided_slice %13 {offsets = [8, 0], sizes = [2, 128], strides = [1, 1]} : vector<16x128xf32> to vector<2x128xf32>
    %cst_25 = arith.constant dense<0.000000e+00> : vector<2x128xf32>
    %101 = tpu.matmul %99, %1, %cst_25 {dimension_numbers = #tpu.dot_dimension_numbers<[1], [0], [0], [1], [0, 0, 1, 1], [], []>} : vector<2x32xf32>, vector<32x128xf32>, vector<2x128xf32> -> vector<2x128xf32>
    %102 = arith.addf %100, %101 : vector<2x128xf32>
    %103 = arith.negf %102 : vector<2x128xf32>
    %104 = math.exp %103 : vector<2x128xf32>
    %cst_26 = arith.constant 1.000000e+00 : f32
    %105 = vector.broadcast %cst_26 : f32 to vector<2x128xf32>
    %106 = arith.addf %105, %104 : vector<2x128xf32>
    %107 = arith.divf %105, %106 : vector<2x128xf32>
    %108 = vector.extract_strided_slice %107 {offsets = [0, 0], sizes = [2, 32], strides = [1, 1]} : vector<2x128xf32> to vector<2x32xf32>
    %109 = vector.extract_strided_slice %107 {offsets = [0, 32], sizes = [2, 32], strides = [1, 1]} : vector<2x128xf32> to vector<2x32xf32>
    %110 = vector.extract_strided_slice %107 {offsets = [0, 64], sizes = [2, 32], strides = [1, 1]} : vector<2x128xf32> to vector<2x32xf32>
    %111 = vector.extract_strided_slice %107 {offsets = [0, 96], sizes = [2, 32], strides = [1, 1]} : vector<2x128xf32> to vector<2x32xf32>
    %cst_27 = arith.constant 2.000000e+00 : f32
    %112 = vector.broadcast %cst_27 : f32 to vector<2x32xf32>
    %113 = arith.mulf %112, %111 : vector<2x32xf32>
    %cst_28 = arith.constant 1.000000e+00 : f32
    %114 = vector.broadcast %cst_28 : f32 to vector<2x32xf32>
    %115 = arith.subf %113, %114 : vector<2x32xf32>
    %116 = arith.mulf %108, %97 : vector<2x32xf32>
    %117 = arith.mulf %109, %115 : vector<2x32xf32>
    %118 = arith.addf %116, %117 : vector<2x32xf32>
    %119 = math.tanh %118 : vector<2x32xf32>
    %120 = arith.mulf %110, %119 : vector<2x32xf32>
    %121 = vector.extract_strided_slice %13 {offsets = [10, 0], sizes = [2, 128], strides = [1, 1]} : vector<16x128xf32> to vector<2x128xf32>
    %cst_29 = arith.constant dense<0.000000e+00> : vector<2x128xf32>
    %122 = tpu.matmul %120, %1, %cst_29 {dimension_numbers = #tpu.dot_dimension_numbers<[1], [0], [0], [1], [0, 0, 1, 1], [], []>} : vector<2x32xf32>, vector<32x128xf32>, vector<2x128xf32> -> vector<2x128xf32>
    %123 = arith.addf %121, %122 : vector<2x128xf32>
    %124 = arith.negf %123 : vector<2x128xf32>
    %125 = math.exp %124 : vector<2x128xf32>
    %cst_30 = arith.constant 1.000000e+00 : f32
    %126 = vector.broadcast %cst_30 : f32 to vector<2x128xf32>
    %127 = arith.addf %126, %125 : vector<2x128xf32>
    %128 = arith.divf %126, %127 : vector<2x128xf32>
    %129 = vector.extract_strided_slice %128 {offsets = [0, 0], sizes = [2, 32], strides = [1, 1]} : vector<2x128xf32> to vector<2x32xf32>
    %130 = vector.extract_strided_slice %128 {offsets = [0, 32], sizes = [2, 32], strides = [1, 1]} : vector<2x128xf32> to vector<2x32xf32>
    %131 = vector.extract_strided_slice %128 {offsets = [0, 64], sizes = [2, 32], strides = [1, 1]} : vector<2x128xf32> to vector<2x32xf32>
    %132 = vector.extract_strided_slice %128 {offsets = [0, 96], sizes = [2, 32], strides = [1, 1]} : vector<2x128xf32> to vector<2x32xf32>
    %cst_31 = arith.constant 2.000000e+00 : f32
    %133 = vector.broadcast %cst_31 : f32 to vector<2x32xf32>
    %134 = arith.mulf %133, %132 : vector<2x32xf32>
    %cst_32 = arith.constant 1.000000e+00 : f32
    %135 = vector.broadcast %cst_32 : f32 to vector<2x32xf32>
    %136 = arith.subf %134, %135 : vector<2x32xf32>
    %137 = arith.mulf %129, %118 : vector<2x32xf32>
    %138 = arith.mulf %130, %136 : vector<2x32xf32>
    %139 = arith.addf %137, %138 : vector<2x32xf32>
    %140 = math.tanh %139 : vector<2x32xf32>
    %141 = arith.mulf %131, %140 : vector<2x32xf32>
    %142 = vector.extract_strided_slice %13 {offsets = [12, 0], sizes = [2, 128], strides = [1, 1]} : vector<16x128xf32> to vector<2x128xf32>
    %cst_33 = arith.constant dense<0.000000e+00> : vector<2x128xf32>
    %143 = tpu.matmul %141, %1, %cst_33 {dimension_numbers = #tpu.dot_dimension_numbers<[1], [0], [0], [1], [0, 0, 1, 1], [], []>} : vector<2x32xf32>, vector<32x128xf32>, vector<2x128xf32> -> vector<2x128xf32>
    %144 = arith.addf %142, %143 : vector<2x128xf32>
    %145 = arith.negf %144 : vector<2x128xf32>
    %146 = math.exp %145 : vector<2x128xf32>
    %cst_34 = arith.constant 1.000000e+00 : f32
    %147 = vector.broadcast %cst_34 : f32 to vector<2x128xf32>
    %148 = arith.addf %147, %146 : vector<2x128xf32>
    %149 = arith.divf %147, %148 : vector<2x128xf32>
    %150 = vector.extract_strided_slice %149 {offsets = [0, 0], sizes = [2, 32], strides = [1, 1]} : vector<2x128xf32> to vector<2x32xf32>
    %151 = vector.extract_strided_slice %149 {offsets = [0, 32], sizes = [2, 32], strides = [1, 1]} : vector<2x128xf32> to vector<2x32xf32>
    %152 = vector.extract_strided_slice %149 {offsets = [0, 64], sizes = [2, 32], strides = [1, 1]} : vector<2x128xf32> to vector<2x32xf32>
    %153 = vector.extract_strided_slice %149 {offsets = [0, 96], sizes = [2, 32], strides = [1, 1]} : vector<2x128xf32> to vector<2x32xf32>
    %cst_35 = arith.constant 2.000000e+00 : f32
    %154 = vector.broadcast %cst_35 : f32 to vector<2x32xf32>
    %155 = arith.mulf %154, %153 : vector<2x32xf32>
    %cst_36 = arith.constant 1.000000e+00 : f32
    %156 = vector.broadcast %cst_36 : f32 to vector<2x32xf32>
    %157 = arith.subf %155, %156 : vector<2x32xf32>
    %158 = arith.mulf %150, %139 : vector<2x32xf32>
    %159 = arith.mulf %151, %157 : vector<2x32xf32>
    %160 = arith.addf %158, %159 : vector<2x32xf32>
    %161 = math.tanh %160 : vector<2x32xf32>
    %162 = arith.mulf %152, %161 : vector<2x32xf32>
    %163 = vector.extract_strided_slice %13 {offsets = [14, 0], sizes = [2, 128], strides = [1, 1]} : vector<16x128xf32> to vector<2x128xf32>
    %cst_37 = arith.constant dense<0.000000e+00> : vector<2x128xf32>
    %164 = tpu.matmul %162, %1, %cst_37 {dimension_numbers = #tpu.dot_dimension_numbers<[1], [0], [0], [1], [0, 0, 1, 1], [], []>} : vector<2x32xf32>, vector<32x128xf32>, vector<2x128xf32> -> vector<2x128xf32>
    %165 = arith.addf %163, %164 : vector<2x128xf32>
    %166 = arith.negf %165 : vector<2x128xf32>
    %167 = math.exp %166 : vector<2x128xf32>
    %cst_38 = arith.constant 1.000000e+00 : f32
    %168 = vector.broadcast %cst_38 : f32 to vector<2x128xf32>
    %169 = arith.addf %168, %167 : vector<2x128xf32>
    %170 = arith.divf %168, %169 : vector<2x128xf32>
    %171 = vector.extract_strided_slice %170 {offsets = [0, 0], sizes = [2, 32], strides = [1, 1]} : vector<2x128xf32> to vector<2x32xf32>
    %172 = vector.extract_strided_slice %170 {offsets = [0, 32], sizes = [2, 32], strides = [1, 1]} : vector<2x128xf32> to vector<2x32xf32>
    %173 = vector.extract_strided_slice %170 {offsets = [0, 64], sizes = [2, 32], strides = [1, 1]} : vector<2x128xf32> to vector<2x32xf32>
    %174 = vector.extract_strided_slice %170 {offsets = [0, 96], sizes = [2, 32], strides = [1, 1]} : vector<2x128xf32> to vector<2x32xf32>
    %cst_39 = arith.constant 2.000000e+00 : f32
    %175 = vector.broadcast %cst_39 : f32 to vector<2x32xf32>
    %176 = arith.mulf %175, %174 : vector<2x32xf32>
    %cst_40 = arith.constant 1.000000e+00 : f32
    %177 = vector.broadcast %cst_40 : f32 to vector<2x32xf32>
    %178 = arith.subf %176, %177 : vector<2x32xf32>
    %179 = arith.mulf %171, %160 : vector<2x32xf32>
    %180 = arith.mulf %172, %178 : vector<2x32xf32>
    %181 = arith.addf %179, %180 : vector<2x32xf32>
    %182 = math.tanh %181 : vector<2x32xf32>
    %183 = arith.mulf %173, %182 : vector<2x32xf32>
    %cst_41 = arith.constant dense<0.000000e+00> : vector<2x128xf32>
    %184 = tpu.matmul %183, %3, %cst_41 {dimension_numbers = #tpu.dot_dimension_numbers<[1], [0], [0], [1], [0, 0, 1, 1], [], []>} : vector<2x32xf32>, vector<32x128xf32>, vector<2x128xf32> -> vector<2x128xf32>
    %185 = vector.broadcast %4 : vector<1x128xf32> to vector<2x128xf32>
    %186 = arith.addf %184, %185 : vector<2x128xf32>
    %c0_42 = arith.constant 0 : index
    %c0_43 = arith.constant 0 : index
    %187 = vector.load %arg2[%c0_42, %c0_43] : memref<2x128xf32, #tpu.memory_space<vmem>>, vector<2x128xf32>
    tpu.vector_store %arg2[%c0_42, %c0_43], %186 {strides = array<i32>} : memref<2x128xf32, #tpu.memory_space<vmem>>, vector<2x128xf32>,
    return
  }
}

</mosaic_0001>

<bundles_post_ra>
// kernel: my_module_lstm.1
= control target key start
LH: loop header
LB: loop body
LE: loop exit
PB: predicated region body
PF: predicated region fallthrough
CT: control target
= control target key end

     0   :  { %7 = vsyncpa [#allocation3], 0  ;;  %s1603_s0 = inlined_call_operand.vmem [shape: s32[16,1], index: 0, kind: input, shape index: {}]   ;;  %s1604_s1 = inlined_call_operand.hbm [shape: f32[96,128], index: 1, kind: input, shape index: {}]   ;;  %s1605_s2 = inlined_call_operand.hbm [shape: f32[2,128], index: 2, kind: output, shape index: {}]  }
   0x1   :  { %8 = vsyncpa [#allocation4], 0  ;;  %s1437_s9 = smov [#allocation2]   ;;  %s1389_s13 = scalar_lea.hbm %s1604_s1, 1536 }
   0x2   :  { %s16_s10 = sshll.u32 %s1437_s9, 4  ;;  %p1390_p0 = scmp.ne.s32.totalorder %s1604_s1, %s1389_s13  ;;  %s17_s10 = int_to_ptr.vmem [resolvable:$true] %s16_s10 }
   0x3   :  { %p1393_p1 = scmp.lt.u32.totalorder %s1389_s13, %s1604_s1 }
   0x5   :  { %p1395_p2 = pnand %p1393_p1, %p1390_p0 }
   0x7   :  { %1398 = shalt.err (!%p1395_p2)
}
   0x8   :  { %s1399_s18 = scalar_lea.vmem %s17_s10, 1536  ;;  %p1404_p4 = scmp.lt.s32.totalorder %s17_s10, %s17_s10 }
   0x9   :  { %p1400_p3 = scmp.ne.s32.totalorder %s17_s10, %s1399_s18  ;;  %p1405_p5 = scmp.lt.s32.totalorder %s1399_s18, %s1399_s18 }
   0xb   :  { %p1406_p6 = por %p1405_p5, %p1404_p4 }
   0xd   :  { %p1407_p7 = pnand %p1406_p6, %p1400_p3 }
   0xf   :  { %1410 = shalt.err (!%p1407_p7)
}
  0x10   :  { %s1438_s19 = smov 128   ;;  %s1439_s20 = smov 8  }
  0x11   :  { %22 = dma.hbm_to_vmem [thread:$0]  %s1604_s1, 1536, %s17_s10, [#allocation3], %s1438_s19, %s1438_s19, %s1439_s20  }
  0x12   :  { %1433 = dma.done.wait [#allocation3], 1536  }
  0x13   :  { %1434 = vsyncadd [#allocation3], 4294965760  ;;  %v1440_v0 = vmov 0   ;;  %v38_v1 = vld [vmem:[%s1603_s0] sm:$0xff]  ;;  %v28_v2 = vld [vmem:[#allocation2 + $0x10] sm:$0xff]  ;;  %v1441_v3 = vmov 0.0|0.0   ;;  %v40_v14 = vlaneseq }
  0x14   :  { %1340 = vset.pattern.permute.xlu0 %v1440_v0  ;;  %1276 = vmatprep.subr.bf16.mxu1 %v1441_v3  ;;  %v29_v4 = vld [vmem:[#allocation2 + $0x18] sm:$0xff]  ;;  %v26_v5 = vld [vmem:[#allocation2] sm:$0xff]  ;;  %v27_v6 = vld [vmem:[#allocation2 + $0x8] sm:$0xff]  ;;  %vm1442_vm0 = vmmov 0   ;;  %v1443_v13 = vmov 0.0   ;;  %vm58_vm1 = vcmask 130048  }
  0x15   :  { %43 = vperm.xlu0 %1340, %v38_v1   ;;  %v39_v7 = vld [vmem:[%s1603_s0 + $0x8] sm:$0xff]  ;;  %v1481_v8 = vpack.c.bf16 %v29_v4, %v28_v2  ;;  %v1272_v9 = vpack.c.bf16 %v27_v6, %v26_v5  ;;  %v30_v10 = vld [vmem:[#allocation2 + $0x20] sm:$0xff]  ;;  %1181 = vmatprep.mubr.msk.f32.mxu1 %vm1442_vm0, %v1443_v13  ;;  %v41_v15 = vand.u32 127, %v40_v14  ;;  %v1089_v22 = vld [vmem:[#allocation2 + $0x30] ss:$0 sm:$0xff]  ;;  %s1444_s0 = smov 64  }
  0x16   :  { %v31_v11 = vld [vmem:[#allocation2 + $0x28] sm:$0xff]  ;;  %s1445_s1 = smov 96   ;;  %vm140_vm4 = vcmask 261120   ;;  %s1446_s27 = smov [#allocation5]  }
  0x17   :  { %1278 = vmatpush3.bf16.msra.mxu1 %v1481_v8  ;;  %1273 = vmatprep.subr.bf16.mxu0 %v1272_v9  ;;  %v1484_v12 = vpack.c.bf16 %v31_v11, %v30_v10  ;;  %s1078_s28 = sshll.u32 %s1446_s27, 4  ;;  %s1079_s28 = int_to_ptr.vmem [resolvable:$true] %s1078_s28 }
  0x18   :  { %1275 = vmatpush3.bf16.msra.mxu0 %v1272_v9  ;;  %1279 = vmatprep.subr.bf16.mxu1 %v1441_v3  ;;  %s1411_s29 = scalar_lea.vmem %s1079_s28, 32  ;;  %p1416_p9 = scmp.lt.s32.totalorder %s1079_s28, %s1079_s28 }
  0x19   :  { %46 = vperm.xlu0 %1340, %v39_v7   ;;  %1282 = vmatprep.subr.bf16.mxu0 %v1441_v3  ;;  %p1412_p8 = scmp.ne.s32.totalorder %s1079_s28, %s1411_s29  ;;  %p1417_p10 = scmp.lt.s32.totalorder %s1411_s29, %s1411_s29 }
  0x1b   :  { %1281 = vmatpush3.bf16.msra.mxu1 %v1484_v12  ;;  %p1418_p11 = por %p1417_p10, %p1416_p9 }
  0x1c   :  { %1288 = vmatprep.subr.bf16.mxu1 %v1441_v3 }
  0x1d   :  { %p1419_p12 = pnand %p1418_p11, %p1412_p8 }
  0x1e   :  { %1182 = vmatmul.mubr.f32.vlgmr.msra.gmra.mrb[0].mxu1 %v1443_v13 }
  0x1f   :  { %1290 = vmatpush3.bf16.msra.mxu1 %v1481_v8  ;;  %1203 = vmatprep.mubr.msk.f32.mxu1 %vm1442_vm0, %v1443_v13 }
  0x20   :  { %1291 = vmatprep.subr.bf16.mxu1 %v1441_v3 }
  0x23   :  { %1293 = vmatpush3.bf16.msra.mxu1 %v1484_v12 }
  0x24   :  { %1300 = vmatprep.subr.bf16.mxu1 %v1441_v3 }
  0x94   :  { %v44_v16 = vpop.permute.xlu0 %43 }
  0x95   :  { %vm48_vm2 = vcmp.eq.s32.totalorder %v41_v15, %v44_v16 }
  0x96   :  { %v1087_v17 = vsel %vm48_vm2, 1.0, %v1443_v13 }
  0x97   :  { %1170 = vmatprep.mubr.msk.f32.mxu0 %vm58_vm1, %v1087_v17 }
  0x98   :  { %v47_v18 = vpop.permute.xlu0 %46 }
  0x99   :  { %vm49_vm3 = vcmp.eq.s32.totalorder %v41_v15, %v47_v18 }
  0x9a   :  { %v1088_v19 = vsel %vm49_vm3, 1.0, %v1443_v13 }
  0x9b   :  { %1171 = vmatmul.mubr.msk.f32.vlgmr.msra.gmra.mrb[0].mxu0 %vm58_vm1, %v1088_v19 }
  0x9c   :  { %1284 = vmatpush3.bf16.msra.mxu0 %v1481_v8  ;;  %1192 = vmatprep.mubr.msk.f32.mxu0 %vm1442_vm0, %v1443_v13 }
  0x9d   :  { %1285 = vmatprep.subr.bf16.mxu0 %v1441_v3 }
  0xa0   :  { %1287 = vmatpush3.bf16.msra.mxu0 %v1484_v12 }
  0xa1   :  { %1294 = vmatprep.subr.bf16.mxu0 %v1441_v3 }
  0xf1   :  { %v210_v20 = vpop.f32.mrb[0].mxu1 }
  0xf2   :  { %v1183_v21 = vpop.f32.mrb[1].mxu1 }
 0x16e   :  { %v1172_v23 = vpop.f32.mrb[0].mxu0 }
 0x16f   :  { %v1507_v24 = vadd.f32 %v1172_v23, %v1089_v22  ;;  %v131_v25 = vpop.f32.mrb[1].mxu0 }
 0x170   :  { %v1509_v26 = vadd.f32 %v1089_v22, %v131_v25 }
 0x172   :  { %v214_v27 = vadd.f32 %v210_v20, %v1509_v26 }
 0x174   :  { %v1092_v28 = vmul.f32 -1.442695, %v214_v27 }
 0x176   :  { %1341 = vpow2.f32 %v1092_v28 }
 0x180   :  { %v1342_v29 = vpop.eup %1341 }
 0x181   :  { %v218_v30 = vadd.f32 1.0, %v1342_v29 }
 0x183   :  { %1343 = vrcp.f32 %v218_v30 }
 0x18d   :  { %v1344_v31 = vpop.eup %1343 }
 0x18e   :  { %v221_v32 = vmul.f32 2.0, %v1344_v31  ;;  %v223_v36 = vmul.f32 0.0, %v1344_v31 }
 0x190   :  { %v1093_v33 = vadd.f32 -1.0, %v221_v32 }
 0x192   :  { %225 = vrot.lane.b32.xlu1 %v1093_v33, %s1444_s0 }
 0x204   :  { %v226_v34 = vpop.permute.xlu1 %225 }
 0x205   :  { %v228_v35 = vmul.f32 %v1344_v31, %v226_v34 }
 0x207   :  { %230 = vrot.lane.b32.xlu1 %v228_v35, %s1445_s1 }
 0x279   :  { %v231_v37 = vpop.permute.xlu1 %230 }
 0x27a   :  { %v233_v38 = vadd.f32 %v231_v37, %v223_v36 }
 0x27c   :  { %1345 = vtanh.f32 %v233_v38  ;;  %v328_v55 = vrot.slane %v233_v38, 6 }
 0x286   :  { %v1346_v39 = vpop.eup %1345 }
 0x287   :  { %236 = vrot.lane.b32.xlu0 %v1346_v39, %s1444_s0 }
 0x2f9   :  { %v237_v40 = vpop.permute.xlu0 %236 }
 0x2fa   :  { %v239_v41 = vmul.f32 %v1344_v31, %v237_v40 }
 0x2fc   :  { %241 = vrot.lane.b32.xlu1 %v239_v41, %s1444_s0 }
 0x36e   :  { %v242_v42 = vpop.permute.xlu1 %241 }
 0x36f   :  { %1193 = vmatmul.mubr.msk.f32.vlgmr.msra.gmra.mrb[2].mxu0 %vm140_vm4, %v242_v42 }
 0x370   :  { %1296 = vmatpush3.bf16.msra.mxu0 %v1481_v8  ;;  %1214 = vmatprep.mubr.msk.f32.mxu0 %vm1442_vm0, %v1443_v13 }
 0x371   :  { %1297 = vmatprep.subr.bf16.mxu0 %v1441_v3 }
 0x374   :  { %1299 = vmatpush3.bf16.msra.mxu0 %v1484_v12 }
 0x375   :  { %1306 = vmatprep.subr.bf16.mxu0 %v1441_v3 }
 0x442   :  { %v311_v43 = vpop.f32.mrb[2].mxu0 }
 0x443   :  { %v316_v44 = vrot.slane %v311_v43, 6  ;;  %v1194_v45 = vpop.f32.mrb[3].mxu0 }
 0x445   :  { %v318_v46 = vadd.f32 %v316_v44, %v1509_v26 }
 0x447   :  { %v1095_v47 = vmul.f32 -1.442695, %v318_v46 }
 0x449   :  { %1347 = vpow2.f32 %v1095_v47 }
 0x453   :  { %v1348_v48 = vpop.eup %1347 }
 0x454   :  { %v322_v49 = vadd.f32 1.0, %v1348_v48 }
 0x456   :  { %1349 = vrcp.f32 %v322_v49 }
 0x460   :  { %v1350_v50 = vpop.eup %1349 }
 0x461   :  { %v325_v51 = vmul.f32 2.0, %v1350_v50  ;;  %v330_v56 = vmul.f32 %v1350_v50, %v328_v55 }
 0x463   :  { %v1096_v52 = vadd.f32 -1.0, %v325_v51 }
 0x465   :  { %332 = vrot.lane.b32.xlu0 %v1096_v52, %s1444_s0 }
 0x4d7   :  { %v333_v53 = vpop.permute.xlu0 %332 }
 0x4d8   :  { %v335_v54 = vmul.f32 %v1350_v50, %v333_v53 }
 0x4da   :  { %337 = vrot.lane.b32.xlu1 %v335_v54, %s1445_s1 }
 0x54c   :  { %v338_v57 = vpop.permute.xlu1 %337 }
 0x54d   :  { %v340_v58 = vadd.f32 %v338_v57, %v330_v56 }
 0x54f   :  { %1351 = vtanh.f32 %v340_v58  ;;  %v436_v16 = vrot.slane %v340_v58, 6 }
 0x559   :  { %v1352_v59 = vpop.eup %1351 }
 0x55a   :  { %343 = vrot.lane.b32.xlu0 %v1352_v59, %s1444_s0 }
 0x5cc   :  { %v344_v60 = vpop.permute.xlu0 %343 }
 0x5cd   :  { %v346_v61 = vmul.f32 %v1350_v50, %v344_v60 }
 0x5cf   :  { %v348_v62 = vrot.slane %v346_v61, 2 }
 0x5d1   :  { %349 = vrot.lane.b32.xlu1 %v348_v62, %s1444_s0 }
 0x643   :  { %v350_v63 = vpop.permute.xlu1 %349 }
 0x644   :  { %1204 = vmatmul.mubr.msk.f32.vlgmr.msra.gmra.mrb[2].mxu1 %vm140_vm4, %v350_v63 }
 0x645   :  { %1302 = vmatpush3.bf16.msra.mxu1 %v1481_v8  ;;  %1225 = vmatprep.mubr.msk.f32.mxu1 %vm1442_vm0, %v1443_v13 }
 0x646   :  { %1303 = vmatprep.subr.bf16.mxu1 %v1441_v3 }
 0x649   :  { %1305 = vmatpush3.bf16.msra.mxu1 %v1484_v12 }
 0x64a   :  { %1312 = vmatprep.subr.bf16.mxu1 %v1441_v3 }
 0x717   :  { %v419_v0 = vpop.f32.mrb[2].mxu1 }
 0x718   :  { %v424_v1 = vrot.slane %v419_v0, 4  ;;  %v1205_v2 = vpop.f32.mrb[3].mxu1 }
 0x71a   :  { %v426_v4 = vadd.f32 %v424_v1, %v1509_v26 }
 0x71c   :  { %v1098_v5 = vmul.f32 -1.442695, %v426_v4 }
 0x71e   :  { %1353 = vpow2.f32 %v1098_v5 }
 0x728   :  { %v1354_v6 = vpop.eup %1353 }
 0x729   :  { %v430_v7 = vadd.f32 1.0, %v1354_v6 }
 0x72b   :  { %1355 = vrcp.f32 %v430_v7 }
 0x735   :  { %v1356_v9 = vpop.eup %1355 }
 0x736   :  { %v433_v10 = vmul.f32 2.0, %v1356_v9  ;;  %v438_v17 = vmul.f32 %v1356_v9, %v436_v16 }
 0x738   :  { %v1099_v11 = vadd.f32 -1.0, %v433_v10 }
 0x73a   :  { %440 = vrot.lane.b32.xlu0 %v1099_v11, %s1444_s0 }
 0x7ac   :  { %v441_v14 = vpop.permute.xlu0 %440 }
 0x7ad   :  { %v443_v15 = vmul.f32 %v1356_v9, %v441_v14 }
 0x7af   :  { %445 = vrot.lane.b32.xlu1 %v443_v15, %s1445_s1 }
 0x821   :  { %v446_v18 = vpop.permute.xlu1 %445 }
 0x822   :  { %v448_v19 = vadd.f32 %v446_v18, %v438_v17 }
 0x824   :  { %1357 = vtanh.f32 %v448_v19  ;;  %v544_v39 = vrot.slane %v448_v19, 6 }
 0x82e   :  { %v1358_v20 = vpop.eup %1357 }
 0x82f   :  { %451 = vrot.lane.b32.xlu0 %v1358_v20, %s1444_s0 }
 0x8a1   :  { %v452_v21 = vpop.permute.xlu0 %451 }
 0x8a2   :  { %v454_v22 = vmul.f32 %v1356_v9, %v452_v21 }
 0x8a4   :  { %v456_v23 = vrot.slane %v454_v22, 4 }
 0x8a6   :  { %457 = vrot.lane.b32.xlu1 %v456_v23, %s1444_s0 }
 0x918   :  { %v458_v25 = vpop.permute.xlu1 %457 }
 0x919   :  { %1215 = vmatmul.mubr.msk.f32.vlgmr.msra.gmra.mrb[4].mxu0 %vm140_vm4, %v458_v25 }
 0x91a   :  { %1308 = vmatpush3.bf16.msra.mxu0 %v1481_v8  ;;  %1236 = vmatprep.mubr.msk.f32.mxu0 %vm1442_vm0, %v1443_v13 }
 0x91b   :  { %1309 = vmatprep.subr.bf16.mxu0 %v1441_v3 }
 0x91e   :  { %1311 = vmatpush3.bf16.msra.mxu0 %v1484_v12 }
 0x91f   :  { %1318 = vmatprep.subr.bf16.mxu0 %v1441_v3 }
 0x9ec   :  { %v527_v27 = vpop.f32.mrb[4].mxu0 }
 0x9ed   :  { %v532_v28 = vrot.slane %v527_v27, 2  ;;  %v1216_v29 = vpop.f32.mrb[5].mxu0 }
 0x9ef   :  { %v534_v30 = vadd.f32 %v532_v28, %v1509_v26 }
 0x9f1   :  { %v1101_v31 = vmul.f32 -1.442695, %v534_v30 }
 0x9f3   :  { %1359 = vpow2.f32 %v1101_v31 }
 0x9fd   :  { %v1360_v32 = vpop.eup %1359 }
 0x9fe   :  { %v538_v33 = vadd.f32 1.0, %v1360_v32 }
 0xa00   :  { %1361 = vrcp.f32 %v538_v33 }
 0xa0a   :  { %v1362_v34 = vpop.eup %1361 }
 0xa0b   :  { %v541_v35 = vmul.f32 2.0, %v1362_v34  ;;  %v546_v40 = vmul.f32 %v1362_v34, %v544_v39 }
 0xa0d   :  { %v1102_v36 = vadd.f32 -1.0, %v541_v35 }
 0xa0f   :  { %548 = vrot.lane.b32.xlu0 %v1102_v36, %s1444_s0 }
 0xa81   :  { %v549_v37 = vpop.permute.xlu0 %548 }
 0xa82   :  { %v551_v38 = vmul.f32 %v1362_v34, %v549_v37 }
 0xa84   :  { %553 = vrot.lane.b32.xlu1 %v551_v38, %s1445_s1 }
 0xaf6   :  { %v554_v41 = vpop.permute.xlu1 %553 }
 0xaf7   :  { %v556_v42 = vadd.f32 %v554_v41, %v546_v40 }
 0xaf9   :  { %1363 = vtanh.f32 %v556_v42  ;;  %v649_v58 = vrot.slane %v556_v42, 6 }
 0xb03   :  { %v1364_v26 = vpop.eup %1363 }
 0xb04   :  { %559 = vrot.lane.b32.xlu0 %v1364_v26, %s1444_s0 }
 0xb76   :  { %v560_v43 = vpop.permute.xlu0 %559 }
 0xb77   :  { %v562_v44 = vmul.f32 %v1362_v34, %v560_v43 }
 0xb79   :  { %v564_v45 = vrot.slane %v562_v44, 6 }
 0xb7b   :  { %565 = vrot.lane.b32.xlu1 %v564_v45, %s1444_s0 }
 0xbed   :  { %v566_v46 = vpop.permute.xlu1 %565 }
 0xbee   :  { %1226 = vmatmul.mubr.msk.f32.vlgmr.msra.gmra.mrb[4].mxu1 %vm140_vm4, %v566_v46 }
 0xbef   :  { %1314 = vmatpush3.bf16.msra.mxu1 %v1481_v8  ;;  %1247 = vmatprep.mubr.msk.f32.mxu1 %vm1442_vm0, %v1443_v13 }
 0xbf0   :  { %1315 = vmatprep.subr.bf16.mxu1 %v1441_v3 }
 0xbf3   :  { %1317 = vmatpush3.bf16.msra.mxu1 %v1484_v12 }
 0xbf4   :  { %1324 = vmatprep.subr.bf16.mxu1 %v1441_v3 }
 0xcc1   :  { %v635_v47 = vpop.f32.mrb[4].mxu1 }
 0xcc2   :  { %v639_v48 = vadd.f32 %v635_v47, %v1507_v24  ;;  %v1227_v49 = vpop.f32.mrb[5].mxu1 }
 0xcc4   :  { %v1104_v50 = vmul.f32 -1.442695, %v639_v48 }
 0xcc6   :  { %1365 = vpow2.f32 %v1104_v50 }
 0xcd0   :  { %v1366_v51 = vpop.eup %1365 }
 0xcd1   :  { %v643_v52 = vadd.f32 1.0, %v1366_v51 }
 0xcd3   :  { %1367 = vrcp.f32 %v643_v52 }
 0xcdd   :  { %v1368_v53 = vpop.eup %1367 }
 0xcde   :  { %v646_v54 = vmul.f32 2.0, %v1368_v53  ;;  %v651_v59 = vmul.f32 %v1368_v53, %v649_v58 }
 0xce0   :  { %v1105_v55 = vadd.f32 -1.0, %v646_v54 }
 0xce2   :  { %653 = vrot.lane.b32.xlu0 %v1105_v55, %s1444_s0 }
 0xd54   :  { %v654_v56 = vpop.permute.xlu0 %653 }
 0xd55   :  { %v656_v57 = vmul.f32 %v1368_v53, %v654_v56 }
 0xd57   :  { %658 = vrot.lane.b32.xlu1 %v656_v57, %s1445_s1 }
 0xdc9   :  { %v659_v60 = vpop.permute.xlu1 %658 }
 0xdca   :  { %v661_v61 = vadd.f32 %v659_v60, %v651_v59 }
 0xdcc   :  { %1369 = vtanh.f32 %v661_v61 }
 0xdd6   :  { %v1370_v62 = vpop.eup %1369 }
 0xdd7   :  { %664 = vrot.lane.b32.xlu0 %v1370_v62, %s1444_s0  ;;  %v34_v62 = vld [vmem:[#allocation2 + $0x40] sm:$0xff] }
 0xe49   :  { %v665_v63 = vpop.permute.xlu0 %664 }
 0xe4a   :  { %v667_v0 = vmul.f32 %v1368_v53, %v665_v63  ;;  %v35_v63 = vld [vmem:[#allocation2 + $0x48] sm:$0xff] }
 0xe4c   :  { %669 = vrot.lane.b32.xlu1 %v667_v0, %s1444_s0 }
 0xebe   :  { %v670_v1 = vpop.permute.xlu1 %669 }
 0xebf   :  { %1237 = vmatmul.mubr.msk.f32.vlgmr.msra.gmra.mrb[6].mxu0 %vm140_vm4, %v670_v1  ;;  %v36_v1 = vld [vmem:[#allocation2 + $0x50] sm:$0xff] }
 0xec0   :  { %1320 = vmatpush3.bf16.msra.mxu0 %v1481_v8  ;;  %1258 = vmatprep.mubr.msk.f32.mxu0 %vm1442_vm0, %v1443_v13 }
 0xec1   :  { %1321 = vmatprep.subr.bf16.mxu0 %v1441_v3 }
 0xec4   :  { %1323 = vmatpush3.bf16.msra.mxu0 %v1484_v12  ;;  %v756_v12 = vrot.slane %v661_v61, 6 }
 0xf92   :  { %v739_v2 = vpop.f32.mrb[6].mxu0 }
 0xf93   :  { %v744_v4 = vrot.slane %v739_v2, 6  ;;  %v1238_v5 = vpop.f32.mrb[7].mxu0  ;;  %v1328_v2 = vpack.c.bf16 %v36_v1, %v35_v63 }
 0xf95   :  { %v746_v6 = vadd.f32 %v744_v4, %v1507_v24 }
 0xf97   :  { %v1107_v7 = vmul.f32 -1.442695, %v746_v6 }
 0xf99   :  { %1371 = vpow2.f32 %v1107_v7 }
 0xfa3   :  { %v1372_v9 = vpop.eup %1371 }
 0xfa4   :  { %v750_v10 = vadd.f32 1.0, %v1372_v9 }
 0xfa6   :  { %1373 = vrcp.f32 %v750_v10  ;;  %v1115_v10 = vld [vmem:[#allocation2 + $0x58] ss:$0 sm:$0xff] }
 0xfb0   :  { %v1374_v11 = vpop.eup %1373 }
 0xfb1   :  { %v753_v14 = vmul.f32 2.0, %v1374_v11  ;;  %v758_v17 = vmul.f32 %v1374_v11, %v756_v12 }
 0xfb3   :  { %v1108_v8 = vadd.f32 -1.0, %v753_v14 }
 0xfb5   :  { %760 = vrot.lane.b32.xlu0 %v1108_v8, %s1444_s0 }
0x1027   :  { %v761_v15 = vpop.permute.xlu0 %760 }
0x1028   :  { %v763_v16 = vmul.f32 %v1374_v11, %v761_v15 }
0x102a   :  { %765 = vrot.lane.b32.xlu1 %v763_v16, %s1445_s1 }
0x109c   :  { %v766_v18 = vpop.permute.xlu1 %765 }
0x109d   :  { %v768_v19 = vadd.f32 %v766_v18, %v758_v17 }
0x109f   :  { %1375 = vtanh.f32 %v768_v19 }
0x10a9   :  { %v1376_v20 = vpop.eup %1375 }
0x10aa   :  { %771 = vrot.lane.b32.xlu0 %v1376_v20, %s1444_s0 }
0x111c   :  { %v772_v21 = vpop.permute.xlu0 %771 }
0x111d   :  { %v774_v22 = vmul.f32 %v1374_v11, %v772_v21 }
0x111f   :  { %v776_v23 = vrot.slane %v774_v22, 2 }
0x1121   :  { %777 = vrot.lane.b32.xlu1 %v776_v23, %s1444_s0 }
0x1193   :  { %v778_v25 = vpop.permute.xlu1 %777 }
0x1194   :  { %1248 = vmatmul.mubr.msk.f32.vlgmr.msra.gmra.mrb[6].mxu1 %vm140_vm4, %v778_v25 }
0x1195   :  { %1269 = vmatprep.mubr.msk.f32.mxu1 %vm1442_vm0, %v1443_v13  ;;  %v864_v13 = vrot.slane %v768_v19, 6 }
0x1267   :  { %v847_v27 = vpop.f32.mrb[6].mxu1 }
0x1268   :  { %v852_v28 = vrot.slane %v847_v27, 4  ;;  %v1249_v29 = vpop.f32.mrb[7].mxu1 }
0x126a   :  { %v854_v30 = vadd.f32 %v852_v28, %v1507_v24 }
0x126c   :  { %v1110_v31 = vmul.f32 -1.442695, %v854_v30 }
0x126e   :  { %1377 = vpow2.f32 %v1110_v31 }
0x1278   :  { %v1378_v32 = vpop.eup %1377 }
0x1279   :  { %v858_v33 = vadd.f32 1.0, %v1378_v32 }
0x127b   :  { %1379 = vrcp.f32 %v858_v33 }
0x1285   :  { %v1380_v34 = vpop.eup %1379 }
0x1286   :  { %v861_v35 = vmul.f32 2.0, %v1380_v34  ;;  %v866_v39 = vmul.f32 %v1380_v34, %v864_v13 }
0x1288   :  { %v1111_v36 = vadd.f32 -1.0, %v861_v35 }
0x128a   :  { %868 = vrot.lane.b32.xlu0 %v1111_v36, %s1444_s0 }
0x12fc   :  { %v869_v37 = vpop.permute.xlu0 %868 }
0x12fd   :  { %v871_v38 = vmul.f32 %v1380_v34, %v869_v37 }
0x12ff   :  { %873 = vrot.lane.b32.xlu1 %v871_v38, %s1445_s1 }
0x1371   :  { %v874_v40 = vpop.permute.xlu1 %873 }
0x1372   :  { %v876_v41 = vadd.f32 %v874_v40, %v866_v39 }
0x1374   :  { %1381 = vtanh.f32 %v876_v41  ;;  %v972_v58 = vrot.slane %v876_v41, 6 }
0x137e   :  { %v1382_v42 = vpop.eup %1381 }
0x137f   :  { %879 = vrot.lane.b32.xlu0 %v1382_v42, %s1444_s0 }
0x13f1   :  { %v880_v26 = vpop.permute.xlu0 %879 }
0x13f2   :  { %v882_v43 = vmul.f32 %v1380_v34, %v880_v26 }
0x13f4   :  { %v884_v44 = vrot.slane %v882_v43, 4 }
0x13f6   :  { %885 = vrot.lane.b32.xlu1 %v884_v44, %s1444_s0 }
0x1468   :  { %v886_v45 = vpop.permute.xlu1 %885 }
0x1469   :  { %1259 = vmatmul.mubr.msk.f32.vlgmr.msra.gmra.mrb[8].mxu0 %vm140_vm4, %v886_v45 }
0x153c   :  { %v955_v46 = vpop.f32.mrb[8].mxu0 }
0x153d   :  { %v960_v47 = vrot.slane %v955_v46, 2  ;;  %v1260_v48 = vpop.f32.mrb[9].mxu0 }
0x153f   :  { %v962_v49 = vadd.f32 %v960_v47, %v1507_v24  ;;  %v33_v24 = vld [vmem:[#allocation2 + $0x38] sm:$0xff] }
0x1540   :  { %v1325_v0 = vpack.c.bf16 %v34_v62, %v33_v24 }
0x1541   :  { %v1113_v50 = vmul.f32 -1.442695, %v962_v49 }
0x1542   :  { %1326 = vmatpush3.bf16.msra.mxu1 %v1325_v0 }
0x1543   :  { %1383 = vpow2.f32 %v1113_v50  ;;  %1327 = vmatprep.subr.bf16.mxu1 %v1441_v3 }
0x1546   :  { %1329 = vmatpush3.bf16.msra.mxu1 %v1328_v2 }
0x154d   :  { %v1384_v51 = vpop.eup %1383 }
0x154e   :  { %v966_v52 = vadd.f32 1.0, %v1384_v51 }
0x1550   :  { %1385 = vrcp.f32 %v966_v52 }
0x155a   :  { %v1386_v53 = vpop.eup %1385 }
0x155b   :  { %v969_v54 = vmul.f32 2.0, %v1386_v53  ;;  %v974_v59 = vmul.f32 %v1386_v53, %v972_v58 }
0x155d   :  { %v1114_v55 = vadd.f32 -1.0, %v969_v54 }
0x155f   :  { %976 = vrot.lane.b32.xlu0 %v1114_v55, %s1444_s0 }
0x15d1   :  { %v977_v56 = vpop.permute.xlu0 %976 }
0x15d2   :  { %v979_v57 = vmul.f32 %v1386_v53, %v977_v56 }
0x15d4   :  { %981 = vrot.lane.b32.xlu1 %v979_v57, %s1445_s1 }
0x1646   :  { %v982_v60 = vpop.permute.xlu1 %981 }
0x1647   :  { %v984_v61 = vadd.f32 %v982_v60, %v974_v59 }
0x1649   :  { %1387 = vtanh.f32 %v984_v61 }
0x1653   :  { %v1388_v4 = vpop.eup %1387 }
0x1654   :  { %987 = vrot.lane.b32.xlu0 %v1388_v4, %s1444_s0 }
0x16c6   :  { %v988_v5 = vpop.permute.xlu0 %987 }
0x16c7   :  { %v990_v6 = vmul.f32 %v1386_v53, %v988_v5 }
0x16c9   :  { %v996_v7 = vrot.slane %v990_v6, 6 }
0x16cb   :  { %997 = vrot.lane.b32.xlu1 %v996_v7, %s1444_s0 }
0x173d   :  { %v998_v9 = vpop.permute.xlu1 %997 }
0x173e   :  { %1270 = vmatmul.mubr.msk.f32.vlgmr.msra.gmra.mrb[8].mxu1 %vm140_vm4, %v998_v9 }
0x1811   :  { %v1067_v11 = vpop.f32.mrb[8].mxu1 }
0x1812   :  { %v1068_v14 = vadd.f32 %v1115_v10, %v1067_v11  ;;  %v1271_v8 = vpop.f32.mrb[9].mxu1 }
0x1814   :  { %1071 = vst [vmem:[#allocation5] sm:$0x3] %v1068_v14 }
0x1815   :  { %1422 = shalt.err (!%p1419_p12)
}
0x1816   :  { %s1423_s4 = scalar_lea.hbm %s1605_s2, 32 }
0x1817   :  { %p1424_p13 = scmp.ne.s32.totalorder %s1605_s2, %s1423_s4  ;;  %p1427_p0 = scmp.lt.u32.totalorder %s1423_s4, %s1605_s2 }
0x1819   :  { %p1429_p1 = pnand %p1427_p0, %p1424_p13 }
0x181b   :  { %1432 = shalt.err (!%p1429_p1)
}
0x181c   :  { %1081 = dma.vmem_to_hbm [thread:$0]  %s1079_s28, 32, %s1605_s2, [#allocation4]  }
0x181d   :  { %1435 = dma.done.wait [#allocation4], 32  }
0x181e   :  { %1436 = vsyncadd [#allocation4], 4294967264 }
0x181f   :  { %1085 = vsyncpa [#allocation3], 1 }
0x1820   :  { %1086 = vsyncpa [#allocation4], 1 }

</bundles_post_ra>
